<compile_context>
chip_gen: v5e
topology: v5e:2x2
jax: 0.10.0
libtpu: 0.0.40
codegen_flags: <defaults>
</compile_context>

<pallas_src>
import functools

import jax
import jax.numpy as jnp
from jax.experimental import pallas as pl
from jax.experimental.pallas import tpu as pltpu

LANE = 128       # lane width for padded feature dims
SUBLANE = 16     # bf16 row packing for the batch axis
_MIN_SPLIT_ROWS = 256   # don't split the batch across cores below this


def _round_up(x, m):
    return (x + m - 1) // m * m


def _mlp_kernel(*refs, num_layers, out_dim, out_pad):
    """refs = (x_ref, w0, b0, w1, b1, ..., w_{L-1}, b_{L-1}, out_ref).

    x_ref:   (tile_b, in_dim)        bf16 (lane dim unpadded)
    w_i:     (k_pad_i, n_pad_i)      bf16 (zero-padded, VMEM-resident)
    b_i:     (1, n_pad_i)            f32  (zero-padded)
    out_ref: (tile_b, out_pad)       f32 or bf16
    """
    x_ref = refs[0]
    out_ref = refs[-1]
    param_refs = refs[1:-1]

    h = x_ref[...]                           # bf16 activations for layer 0
    for i in range(num_layers):
        w = param_refs[2 * i][...]           # bf16 (k_pad, n_pad)
        b = param_refs[2 * i + 1][...]       # f32  (1, n_pad)
        y = jnp.dot(h.astype(jnp.bfloat16), w,
                    preferred_element_type=jnp.float32) + b
        if i < num_layers - 1:
            # F.relu(drop(layer(x))) with dropout == identity (eval mode)
            h = jnp.maximum(y, 0.0)          # f32 VPU path (v5e-safe)
        else:
            h = y                            # last layer: no ReLU

    # Mask padded logit lanes only when padding exists (compile-time check),
    # so the LogSoftmax (dim=1) ignores them.
    if out_dim < out_pad:
        col = jax.lax.broadcasted_iota(jnp.int32, h.shape, dimension=1)
        h = jnp.where(col < out_dim, h, jnp.float32(-1e30))

    # Numerically stable LogSoftmax over the feature axis.
    m = jnp.max(h, axis=1, keepdims=True)
    shifted = h - m
    lse = jnp.log(jnp.sum(jnp.exp(shifted), axis=1, keepdims=True))
    out_ref[...] = (shifted - lse).astype(out_ref.dtype)


def prepare_params(params):
    """One-time pad/cast of weights & biases (hoisted out of the forward path).

    params: list of (W (in,out) f32, b (1,out) f32).
    Returns (flat_params, meta) where flat_params is a tuple of padded arrays
    (w0, b0, w1, b1, ...) and meta is static metadata for the forward.
    """
    flat = []
    layer_pads = []
    in_dim = params[0][0].shape[0]
    prev_dim = in_dim
    prev_pad = in_dim          # first layer's K dim stays unpadded (== in_dim)
    for (w, b) in params:
        b = b.reshape(1, -1)
        fi, fo = w.shape
        assert fi == prev_dim, "layer sizes must chain"
        fo_pad = _round_up(fo, LANE)
        w_p = (jnp.zeros((prev_pad, fo_pad), jnp.bfloat16)
               .at[:fi, :fo].set(w.astype(jnp.bfloat16)))
        b_p = jnp.zeros((1, fo_pad), jnp.float32).at[:, :fo].set(
            b.astype(jnp.float32))
        flat += [w_p, b_p]
        layer_pads.append((prev_pad, fo_pad))
        prev_pad, prev_dim = fo_pad, fo
    meta = (in_dim, prev_dim, tuple(layer_pads))
    return tuple(flat), meta


@functools.partial(jax.jit, static_argnames=("meta", "tile_b", "out_dtype"))
def neural_net_forward(x, flat_params, *, meta, tile_b=1024,
                       out_dtype=jnp.float32):
    """x: (B, in_dim) float32.  flat_params/meta from prepare_params()."""
    in_dim, out_dim, layer_pads = meta
    num_layers = len(layer_pads)
    out_pad = layer_pads[-1][1]
    batch = x.shape[0]
    assert x.shape[1] == in_dim

    # Batch padded only to a sublane multiple; lane dim stays unpadded and the
    # input is cast to bf16 once here (kernel feeds the MXU bf16 anyway).
    batch_pad = _round_up(batch, SUBLANE)
    x_p = x.astype(jnp.bfloat16)
    if batch_pad != batch:
        x_p = jnp.zeros((batch_pad, in_dim), jnp.bfloat16).at[:batch].set(x_p)

    # Batch tiling: fat tiles amortize per-grid-step overhead, but keep >= 2
    # steps when there is enough work so v7x's two TensorCores both get tiles.
    tb = min(tile_b, batch_pad)
    if batch_pad >= _MIN_SPLIT_ROWS:
        tb = min(tb, _round_up(pl.cdiv(batch_pad, 2), SUBLANE))
    tb = max(SUBLANE, _round_up(tb, SUBLANE))
    n_steps = pl.cdiv(batch_pad, tb)     # ragged last tile handled by Pallas

    in_specs = [pl.BlockSpec((tb, in_dim), lambda i: (i, 0))]
    for (k_pad, n_pad) in layer_pads:
        # Constant index_map -> weights/biases resident across all grid steps.
        in_specs += [pl.BlockSpec((k_pad, n_pad), lambda i: (0, 0)),
                     pl.BlockSpec((1, n_pad), lambda i: (0, 0))]

    kernel = functools.partial(_mlp_kernel, num_layers=num_layers,
                               out_dim=out_dim, out_pad=out_pad)

    out = pl.pallas_call(
        kernel,
        out_shape=jax.ShapeDtypeStruct((batch_pad, out_pad), out_dtype),
        grid_spec=pltpu.PrefetchScalarGridSpec(
            num_scalar_prefetch=0,
            grid=(n_steps,),
            in_specs=in_specs,
            out_specs=pl.BlockSpec((tb, out_pad), lambda i: (i, 0)),
        ),
        compiler_params=pltpu.CompilerParams(
            dimension_semantics=("parallel",),
            vmem_limit_bytes=32 * 1024 * 1024,
        ),
    )(x_p, *flat_params)

    return out[:batch, :out_dim]


def init_params(key, layer_sizes):
    """Deterministic init mimicking nn.Linear (uniform(+/- 1/sqrt(fan_in)))."""
    params = []
    for i in range(len(layer_sizes) - 1):
        fan_in = layer_sizes[i]
        fan_out = layer_sizes[i + 1]
        key, wk, bk = jax.random.split(key, 3)
        bound = 1.0 / jnp.sqrt(jnp.float32(fan_in))
        w = jax.random.uniform(wk, (fan_in, fan_out), jnp.float32, -bound, bound)
        b = jax.random.uniform(bk, (1, fan_out), jnp.float32, -bound, bound)
        params.append((w, b))
    return params


def reference_forward(x, params, matmul_dtype=jnp.float32):
    h = x
    for i, (w, b) in enumerate(params):
        y = jnp.dot(h.astype(matmul_dtype), w.astype(matmul_dtype),
                    preferred_element_type=jnp.float32) + b
        h = jnp.maximum(y, 0.0) if i < len(params) - 1 else y
    return jax.nn.log_softmax(h, axis=1)


if __name__ == "__main__":
    # Config implied by the module: a few fully-connected layers.
    input_size, hidden, output_size = 32, 64, 16
    layer_sizes = [input_size, hidden, hidden, output_size]
    batch = 8

    key = jax.random.PRNGKey(0)
    key, xk = jax.random.split(key)
    x = jax.random.normal(xk, (batch, input_size), jnp.float32)
    params = init_params(key, layer_sizes)

    # One-time weight/bias preparation (pad + bf16 cast), hoisted out of the
    # per-forward hot path.
    flat_params, meta = prepare_params(params)

    out = neural_net_forward(x, flat_params, meta=meta)
    out = jax.block_until_ready(out)
    assert out.shape == (batch, output_size)

    # Tight check against a bf16-matmul / f32-accumulate reference (matches the
    # kernel's MXU dtype), plus a sanity check against the pure-f32 reference.
    ref_bf16 = reference_forward(x, params, matmul_dtype=jnp.bfloat16)
    ref_f32 = reference_forward(x, params, matmul_dtype=jnp.float32)
    assert jnp.allclose(out, ref_bf16, atol=2e-3, rtol=2e-3)
    assert jnp.allclose(out, ref_f32, atol=5e-2, rtol=5e-2)

    # Exercise the multi-tile, >=2-grid-step, ragged-last-block path:
    # batch=300 -> padded to 304 rows, tile 128 -> 3 steps (last tile ragged).
    batch2 = 300
    key, xk2 = jax.random.split(key)
    x2 = jax.random.normal(xk2, (batch2, input_size), jnp.float32)
    out2 = jax.block_until_ready(
        neural_net_forward(x2, flat_params, meta=meta, tile_b=128))
    assert out2.shape == (batch2, output_size)
    assert jnp.allclose(out2, reference_forward(x2, params, jnp.bfloat16),
                        atol=2e-3, rtol=2e-3)

    print("KERNEL_OK")
</pallas_src>

<mosaic_0001>
module attributes {stable_mosaic.version = 11 : i64} {
  func.func @_mlp_kernel(%arg0: i32, %arg1: memref<16x32xbf16, #tpu.memory_space<vmem>>, %arg2: memref<32x128xbf16, #tpu.memory_space<vmem>>, %arg3: memref<1x128xf32, #tpu.memory_space<vmem>>, %arg4: memref<128x128xbf16, #tpu.memory_space<vmem>>, %arg5: memref<1x128xf32, #tpu.memory_space<vmem>>, %arg6: memref<128x128xbf16, #tpu.memory_space<vmem>>, %arg7: memref<1x128xf32, #tpu.memory_space<vmem>>, %arg8: memref<16x128xf32, #tpu.memory_space<vmem>>) attributes {dimension_semantics = [#tpu.dimension_semantics<parallel>], iteration_bounds = array<i64: 1>, scalar_prefetch = 0 : i64, scratch_operands = 0 : i64, tpu.core_type = #tpu.core_type<tc>, window_params = [{transform_indices = @transform_0, window_bounds = array<i64: 16, 32>}, {pipeline_mode = #tpu.pipeline_mode<synchronous>, transform_indices = @transform_1, window_bounds = array<i64: 32, 128>}, {pipeline_mode = #tpu.pipeline_mode<synchronous>, transform_indices = @transform_2, window_bounds = array<i64: 1, 128>}, {pipeline_mode = #tpu.pipeline_mode<synchronous>, transform_indices = @transform_3, window_bounds = array<i64: 128, 128>}, {pipeline_mode = #tpu.pipeline_mode<synchronous>, transform_indices = @transform_4, window_bounds = array<i64: 1, 128>}, {pipeline_mode = #tpu.pipeline_mode<synchronous>, transform_indices = @transform_5, window_bounds = array<i64: 128, 128>}, {pipeline_mode = #tpu.pipeline_mode<synchronous>, transform_indices = @transform_6, window_bounds = array<i64: 1, 128>}, {transform_indices = @transform_7, window_bounds = array<i64: 16, 128>}]} {
    %c0 = arith.constant 0 : index
    %c0_0 = arith.constant 0 : index
    %0 = vector.load %arg1[%c0, %c0_0] : memref<16x32xbf16, #tpu.memory_space<vmem>>, vector<16x32xbf16>
    %c0_1 = arith.constant 0 : index
    %c0_2 = arith.constant 0 : index
    %1 = vector.load %arg2[%c0_1, %c0_2] : memref<32x128xbf16, #tpu.memory_space<vmem>>, vector<32x128xbf16>
    %c0_3 = arith.constant 0 : index
    %c0_4 = arith.constant 0 : index
    %2 = vector.load %arg3[%c0_3, %c0_4] : memref<1x128xf32, #tpu.memory_space<vmem>>, vector<1x128xf32>
    %cst = arith.constant dense<0.000000e+00> : vector<16x128xf32>
    %3 = tpu.matmul %0, %1, %cst {dimension_numbers = #tpu.dot_dimension_numbers<[1], [0], [0], [1], [0, 0, 1, 1], [], []>} : vector<16x32xbf16>, vector<32x128xbf16>, vector<16x128xf32> -> vector<16x128xf32>
    %4 = vector.broadcast %2 : vector<1x128xf32> to vector<16x128xf32>
    %5 = arith.addf %3, %4 : vector<16x128xf32>
    %cst_5 = arith.constant 0.000000e+00 : f32
    %6 = vector.broadcast %cst_5 : f32 to vector<16x128xf32>
    %7 = arith.maximumf %5, %6 : vector<16x128xf32>
    %c0_6 = arith.constant 0 : index
    %c0_7 = arith.constant 0 : index
    %8 = vector.load %arg4[%c0_6, %c0_7] : memref<128x128xbf16, #tpu.memory_space<vmem>>, vector<128x128xbf16>
    %c0_8 = arith.constant 0 : index
    %c0_9 = arith.constant 0 : index
    %9 = vector.load %arg5[%c0_8, %c0_9] : memref<1x128xf32, #tpu.memory_space<vmem>>, vector<1x128xf32>
    %10 = arith.truncf %7 : vector<16x128xf32> to vector<16x128xbf16>
    %cst_10 = arith.constant dense<0.000000e+00> : vector<16x128xf32>
    %11 = tpu.matmul %10, %8, %cst_10 {dimension_numbers = #tpu.dot_dimension_numbers<[1], [0], [0], [1], [0, 0, 1, 1], [], []>} : vector<16x128xbf16>, vector<128x128xbf16>, vector<16x128xf32> -> vector<16x128xf32>
    %12 = vector.broadcast %9 : vector<1x128xf32> to vector<16x128xf32>
    %13 = arith.addf %11, %12 : vector<16x128xf32>
    %cst_11 = arith.constant 0.000000e+00 : f32
    %14 = vector.broadcast %cst_11 : f32 to vector<16x128xf32>
    %15 = arith.maximumf %13, %14 : vector<16x128xf32>
    %c0_12 = arith.constant 0 : index
    %c0_13 = arith.constant 0 : index
    %16 = vector.load %arg6[%c0_12, %c0_13] : memref<128x128xbf16, #tpu.memory_space<vmem>>, vector<128x128xbf16>
    %c0_14 = arith.constant 0 : index
    %c0_15 = arith.constant 0 : index
    %17 = vector.load %arg7[%c0_14, %c0_15] : memref<1x128xf32, #tpu.memory_space<vmem>>, vector<1x128xf32>
    %18 = arith.truncf %15 : vector<16x128xf32> to vector<16x128xbf16>
    %cst_16 = arith.constant dense<0.000000e+00> : vector<16x128xf32>
    %19 = tpu.matmul %18, %16, %cst_16 {dimension_numbers = #tpu.dot_dimension_numbers<[1], [0], [0], [1], [0, 0, 1, 1], [], []>} : vector<16x128xbf16>, vector<128x128xbf16>, vector<16x128xf32> -> vector<16x128xf32>
    %20 = vector.broadcast %17 : vector<1x128xf32> to vector<16x128xf32>
    %21 = arith.addf %19, %20 : vector<16x128xf32>
    %22 = tpu.iota {dimensions = array<i32: 1>} : vector<16x128xi32>
    %c16_i32 = arith.constant 16 : i32
    %23 = vector.broadcast %c16_i32 : i32 to vector<16x128xi32>
    %24 = arith.cmpi slt, %22, %23 : vector<16x128xi32>
    %cst_17 = arith.constant -1.000000e+30 : f32
    %25 = vector.broadcast %cst_17 : f32 to vector<16x128xf32>
    %26 = arith.select %24, %21, %25 : vector<16x128xi1>, vector<16x128xf32>
    %cst_18 = arith.constant dense<0xFF800000> : vector<16xf32>
    %27 = vector.multi_reduction <maximumf>, %26, %cst_18 [1] : vector<16x128xf32> to vector<16xf32>
    %28 = vector.shape_cast %27 : vector<16xf32> to vector<16x1xf32>
    %29 = vector.broadcast %28 : vector<16x1xf32> to vector<16x128xf32>
    %30 = arith.subf %26, %29 : vector<16x128xf32>
    %31 = math.exp %30 : vector<16x128xf32>
    %cst_19 = arith.constant dense<0.000000e+00> : vector<16xf32>
    %32 = vector.multi_reduction <add>, %31, %cst_19 [1] : vector<16x128xf32> to vector<16xf32>
    %33 = vector.shape_cast %32 : vector<16xf32> to vector<16x1xf32>
    %34 = math.log %33 : vector<16x1xf32>
    %35 = vector.broadcast %34 : vector<16x1xf32> to vector<16x128xf32>
    %36 = arith.subf %30, %35 : vector<16x128xf32>
    %c0_20 = arith.constant 0 : index
    %c0_21 = arith.constant 0 : index
    %37 = vector.load %arg8[%c0_20, %c0_21] : memref<16x128xf32, #tpu.memory_space<vmem>>, vector<16x128xf32>
    tpu.vector_store %arg8[%c0_20, %c0_21], %36 {strides = array<i32>} : memref<16x128xf32, #tpu.memory_space<vmem>>, vector<16x128xf32>,
    return
  }
  func.func @transform_0(%arg0: i32) -> (i32, i32) {
    %c0_i32 = arith.constant 0 : i32
    %c0_i32_0 = arith.constant 0 : i32
    return %arg0, %c0_i32 : i32, i32
  }
  func.func @transform_1(%arg0: i32) -> (i32, i32) {
    %c0_i32 = arith.constant 0 : i32
    %c0_i32_0 = arith.constant 0 : i32
    %c0_i32_1 = arith.constant 0 : i32
    return %c0_i32, %c0_i32_0 : i32, i32
  }
  func.func @transform_2(%arg0: i32) -> (i32, i32) {
    %c0_i32 = arith.constant 0 : i32
    %c0_i32_0 = arith.constant 0 : i32
    %c0_i32_1 = arith.constant 0 : i32
    return %c0_i32, %c0_i32_0 : i32, i32
  }
  func.func @transform_3(%arg0: i32) -> (i32, i32) {
    %c0_i32 = arith.constant 0 : i32
    %c0_i32_0 = arith.constant 0 : i32
    %c0_i32_1 = arith.constant 0 : i32
    return %c0_i32, %c0_i32_0 : i32, i32
  }
  func.func @transform_4(%arg0: i32) -> (i32, i32) {
    %c0_i32 = arith.constant 0 : i32
    %c0_i32_0 = arith.constant 0 : i32
    %c0_i32_1 = arith.constant 0 : i32
    return %c0_i32, %c0_i32_0 : i32, i32
  }
  func.func @transform_5(%arg0: i32) -> (i32, i32) {
    %c0_i32 = arith.constant 0 : i32
    %c0_i32_0 = arith.constant 0 : i32
    %c0_i32_1 = arith.constant 0 : i32
    return %c0_i32, %c0_i32_0 : i32, i32
  }
  func.func @transform_6(%arg0: i32) -> (i32, i32) {
    %c0_i32 = arith.constant 0 : i32
    %c0_i32_0 = arith.constant 0 : i32
    %c0_i32_1 = arith.constant 0 : i32
    return %c0_i32, %c0_i32_0 : i32, i32
  }
  func.func @transform_7(%arg0: i32) -> (i32, i32) {
    %c0_i32 = arith.constant 0 : i32
    %c0_i32_0 = arith.constant 0 : i32
    return %arg0, %c0_i32 : i32, i32
  }
}

</mosaic_0001>

<bundles_post_ra>
// kernel: neural_net_forward.1
= control target key start
LH: loop header
LB: loop body
LE: loop exit
PB: predicated region body
PF: predicated region fallthrough
CT: control target
= control target key end

     0   :  { %12 = vsyncpa [#allocation3], 0  ;;  %s544_s0 = inlined_call_operand.vmem [shape: bf16[16,32], index: 0, kind: input, shape index: {}]   ;;  %s545_s1 = inlined_call_operand.vmem [shape: bf16[32,128], index: 1, kind: input, shape index: {}]   ;;  %s546_s2 = inlined_call_operand.vmem [shape: f32[1,128], index: 2, kind: input, shape index: {}]   ;;  %s547_s3 = inlined_call_operand.hbm [shape: bf16[128,128], index: 3, kind: input, shape index: {}]   ;;  %s548_s4 = inlined_call_operand.vmem [shape: f32[1,128], index: 4, kind: input, shape index: {}]   ;;  %s549_s5 = inlined_call_operand.hbm [shape: bf16[128,128], index: 5, kind: input, shape index: {}]   ;;  %s550_s6 = inlined_call_operand.vmem [shape: f32[1,128], index: 6, kind: input, shape index: {}]   ;;  %s551_s7 = inlined_call_operand.vmem [shape: f32[16,128], index: 7, kind: output, shape index: {}]  }
   0x1   :  { %s24_s26 = sshll.u32 %s547_s3, 4  ;;  %s25_s26 = int_to_ptr.hbm [resolvable:$true] %s24_s26 }
   0x2   :  { %13 = vsyncpa [#allocation5], 0  ;;  %s470_s27 = smov [#allocation2]   ;;  %s39_s8 = sshll.u32 %s549_s5, 4  ;;  %s40_s8 = int_to_ptr.hbm [resolvable:$true] %s39_s8 }
   0x3   :  { %s26_s28 = sshll.u32 %s470_s27, 4  ;;  %s471_s9 = smov 64   ;;  %s27_s28 = int_to_ptr.vmem [resolvable:$true] %s26_s28 }
   0x4   :  { %s472_s10 = smov 4   ;;  %s473_s11 = smov [#allocation4]  }
   0x5   :  { %32 = dma.hbm_to_vmem [thread:$0]  %s25_s26, 1024, %s27_s28, [#allocation3], %s471_s9, %s471_s9, %s472_s10  }
   0x6   :  { %s41_s12 = sshll.u32 %s473_s11, 4  ;;  %s42_s12 = int_to_ptr.vmem [resolvable:$true] %s41_s12 }
   0x7   :  { %47 = dma.hbm_to_vmem [thread:$0]  %s40_s8, 1024, %s42_s12, [#allocation5], %s471_s9, %s471_s9, %s472_s10  }
   0x8   :  { %466 = dma.done.wait [#allocation3], 1024  }
   0x9   :  { %467 = vsyncadd [#allocation3], 4294966272 }
   0xa   :  { %468 = dma.done.wait [#allocation5], 1024  }
   0xb   :  { %469 = vsyncadd [#allocation5], 4294966272  ;;  %v386_v0 = vld [vmem:[%s545_s1 + $0x8] sm:$0xff]  ;;  %v394_v1 = vld [vmem:[#allocation2 + $0x38] sm:$0xff]  ;;  %vm86_vm0 = vcmask 261120   ;;  %v274_v35 = vlaneseq }
   0xc   :  { %96 = vmatpush.bf16.msra.mxu0 %v386_v0  ;;  %v385_v2 = vld [vmem:[%s545_s1] sm:$0xff]  ;;  %175 = vmatpush.bf16.msra.mxu1 %v394_v1  ;;  %v393_v3 = vld [vmem:[#allocation2 + $0x30] sm:$0xff]  ;;  %v392_v5 = vld [vmem:[#allocation2 + $0x28] sm:$0xff] }
   0xd   :  { %v384_v4 = vld [vmem:[%s544_s0] sm:$0xff]  ;;  %v390_v7 = vld [vmem:[#allocation2 + $0x18] sm:$0xff]  ;;  %v389_v8 = vld [vmem:[#allocation2 + $0x10] sm:$0xff]  ;;  %v275_v36 = vand.u32 127, %v274_v35 }
   0xe   :  { %v391_v6 = vld [vmem:[#allocation2 + $0x20] sm:$0xff]  ;;  %v388_v9 = vld [vmem:[#allocation2 + $0x8] sm:$0xff]  ;;  %v402_v11 = vld [vmem:[#allocation4 + $0x38] sm:$0xff] }
   0xf   :  { %v387_v10 = vld [vmem:[#allocation2] sm:$0xff]  ;;  %260 = vmatpush.bf16.msra.mxu2 %v402_v11  ;;  %v401_v12 = vld [vmem:[#allocation4 + $0x30] sm:$0xff]  ;;  %v400_v13 = vld [vmem:[#allocation4 + $0x28] sm:$0xff]  ;;  %vm276_vm1 = vcmp.lt.s32.totalorder %v275_v36, 16 }
  0x10   :  { %97 = vmatpush.bf16.msra.mxu0 %v385_v2  ;;  %176 = vmatpush.bf16.msra.mxu1 %v393_v3  ;;  %v399_v14 = vld [vmem:[#allocation4 + $0x20] sm:$0xff]  ;;  %v398_v23 = vld [vmem:[#allocation4 + $0x18] sm:$0xff]  ;;  %v397_v24 = vld [vmem:[#allocation4 + $0x10] sm:$0xff] }
  0x11   :  { %v407_v16 = vld [vmem:[%s546_s2] ss:$0 sm:$0xff]  ;;  %v396_v25 = vld [vmem:[#allocation4 + $0x8] sm:$0xff] }
  0x12   :  { %v395_v26 = vld [vmem:[#allocation4] sm:$0xff] }
  0x13   :  { %319 = vmatmul.msk.bf16.vlgmr.msra.gmra.mxu0 %vm86_vm0, %v384_v4  ;;  %261 = vmatpush.bf16.msra.mxu2 %v401_v12  ;;  %v408_v28 = vld [vmem:[%s548_s4] ss:$0 sm:$0xff] }
  0x14   :  { %177 = vmatpush.bf16.msra.mxu1 %v392_v5  ;;  %v409_v37 = vld [vmem:[%s550_s6] ss:$0 sm:$0xff] }
  0x17   :  { %262 = vmatpush.bf16.msra.mxu2 %v400_v13 }
  0x18   :  { %178 = vmatpush.bf16.msra.mxu1 %v391_v6 }
  0x1b   :  { %263 = vmatpush.bf16.msra.mxu2 %v399_v14 }
  0x1c   :  { %179 = vmatpush.bf16.msra.mxu1 %v390_v7 }
  0x1f   :  { %264 = vmatpush.bf16.msra.mxu2 %v398_v23 }
  0x20   :  { %180 = vmatpush.bf16.msra.mxu1 %v389_v8 }
  0x23   :  { %265 = vmatpush.bf16.msra.mxu2 %v397_v24 }
  0x24   :  { %181 = vmatpush.bf16.msra.mxu1 %v388_v9 }
  0x27   :  { %266 = vmatpush.bf16.msra.mxu2 %v396_v25 }
  0x28   :  { %182 = vmatpush.bf16.msra.mxu1 %v387_v10 }
  0x2b   :  { %267 = vmatpush.bf16.msra.mxu2 %v395_v26 }
  0x90   :  { %v99_v15 = vpop.f32.mrf.mxu0 }
  0x91   :  { %v100_v17 = vadd.f32 %v407_v16, %v99_v15 }
  0x93   :  { %v104_v20 = vmax.f32 %v100_v17, 0.0 }
  0x98   :  { %v101_v18 = vpop.f32.mrf.mxu0 }
  0x99   :  { %v102_v19 = vadd.f32 %v407_v16, %v101_v18 }
  0x9b   :  { %v105_v21 = vmax.f32 %v102_v19, 0.0 }
  0x9d   :  { %v123_v22 = vpack.c.bf16 %v105_v21, %v104_v20 }
  0x9f   :  { %183 = vmatmul.bf16.vlgmr.msra.gmra.mxu1 %v123_v22 }
 0x11c   :  { %v184_v27 = vpop.f32.mrf.mxu1 }
 0x11d   :  { %v185_v29 = vadd.f32 %v408_v28, %v184_v27 }
 0x11f   :  { %v189_v32 = vmax.f32 %v185_v29, 0.0 }
 0x124   :  { %v186_v30 = vpop.f32.mrf.mxu1 }
 0x125   :  { %v187_v31 = vadd.f32 %v408_v28, %v186_v30 }
 0x127   :  { %v190_v33 = vmax.f32 %v187_v31, 0.0 }
 0x129   :  { %v208_v34 = vpack.c.bf16 %v190_v33, %v189_v32 }
 0x12b   :  { %268 = vmatmul.bf16.vlgmr.msra.gmra.mxu2 %v208_v34 }
 0x1ae   :  { %v269_v38 = vpop.f32.mrf.mxu2 }
 0x1af   :  { %v270_v39 = vadd.f32 %v409_v37, %v269_v38 }
 0x1b1   :  { %v277_v40 = vsel %vm276_vm1, %v270_v39, -1e+30 }
 0x1b2   :  { %279 = vmax.xlane.f32.xlu0 %v277_v40 }
 0x1b6   :  { %v271_v41 = vpop.f32.mrf.mxu2 }
 0x1b7   :  { %v272_v42 = vadd.f32 %v409_v37, %v271_v41 }
 0x1b9   :  { %v278_v43 = vsel %vm276_vm1, %v272_v42, -1e+30 }
 0x1ba   :  { %281 = vmax.xlane.f32.xlu0 %v278_v43 }
 0x225   :  { %v280_v44 = vpop.xlane.xlu0 %279 }
 0x226   :  { %v283_v45 = vsub.f32 %v277_v40, %v280_v44 }
 0x228   :  { %v285_v46 = vmul.f32 1.442695, %v283_v45 }
 0x22a   :  { %410 = vpow2.f32 %v285_v46 }
 0x22d   :  { %v282_v47 = vpop.xlane.xlu0 %281 }
 0x22e   :  { %v284_v48 = vsub.f32 %v278_v43, %v282_v47 }
 0x230   :  { %v411_v49 = vpop.eup %410  ;;  %v287_v50 = vmul.f32 1.442695, %v284_v48 }
 0x231   :  { %289 = vadd.xlane.f32.xlu1 %v411_v49 }
 0x232   :  { %412 = vpow2.f32 %v287_v50 }
 0x238   :  { %v413_v51 = vpop.eup %412 }
 0x239   :  { %291 = vadd.xlane.f32.xlu1 %v413_v51 }
 0x2a4   :  { %v290_v52 = vpop.xlane.xlu1 %289 }
 0x2a5   :  { %414 = vlog2.f32 %v290_v52 }
 0x2ab   :  { %v415_v53 = vpop.eup %414 }
 0x2ac   :  { %v294_v54 = vmul.f32 0.6931472, %v415_v53  ;;  %v292_v55 = vpop.xlane.xlu1 %291 }
 0x2ad   :  { %416 = vlog2.f32 %v292_v55 }
 0x2ae   :  { %v297_v56 = vsub.f32 %v283_v45, %v294_v54 }
 0x2b0   :  { %299 = vst [vmem:[%s551_s7] sm:$0xff] %v297_v56 }
 0x2b3   :  { %v417_v57 = vpop.eup %416 }
 0x2b4   :  { %v296_v58 = vmul.f32 0.6931472, %v417_v57 }
 0x2b6   :  { %v298_v59 = vsub.f32 %v284_v48, %v296_v58 }
 0x2b8   :  { %300 = vst [vmem:[%s551_s7 + $0x8] sm:$0xff] %v298_v59 }
 0x2b9   :  { %305 = vsyncpa [#allocation3], 1 }
 0x2ba   :  { %306 = vsyncpa [#allocation5], 1 }

</bundles_post_ra>
